<compile_context>
chip_gen: v7x
topology: tpu7x:2x2x1
jax: 0.10.0
libtpu: 0.0.40
codegen_flags: <defaults>
</compile_context>

<pallas_src>
import math
import functools

import jax
import jax.numpy as jnp
from jax import lax
from jax.experimental import pallas as pl
from jax.experimental.pallas import tpu as pltpu


def linformer_attention_kernel(
    x_ref,       # (1, S, H)  hidden states for one batch element, f32
    wqkv_ref,    # (H, 3H)    fused [Wq/sqrt(hd) | Wk | Wv], (in, out), bf16
    bqkv_ref,    # (1, 3H)    fused [bq/sqrt(hd) | bk | bv], f32
    pkt_ref,     # (K, S)     Linformer key projection, pre-transposed, bf16
    pvt_ref,     # (K, S)     Linformer value projection, pre-transposed, bf16
    out_ref,     # (1, S, H)  f32
    *,
    num_heads: int,
    head_dim: int,
    hidden: int,
):
    x = x_ref[0].astype(jnp.bfloat16)            # (S, H), cast once
    seq_len = x.shape[0]

    # ---- Fused Q/K/V projection: one bf16 MXU matmul, f32 accumulation. ----
    qkv = jnp.dot(x, wqkv_ref[...], preferred_element_type=jnp.float32)
    qkv = qkv + bqkv_ref[...]                    # (S, 3H) f32
    q = qkv[:, :hidden]                          # (S, H)  (already * 1/sqrt(hd))
    hk = qkv[:, hidden:2 * hidden].astype(jnp.bfloat16)   # (S, H)
    hv = qkv[:, 2 * hidden:3 * hidden].astype(jnp.bfloat16)

    # ---- Linformer projection along the sequence axis: proj^T @ h -> (K, H).
    # proj is pre-transposed in the wrapper, so this is a plain matmul (no
    # in-kernel transpose / XLU work feeding the MXU).  Divisor is the number
    # of projection rows actually used == seq_len (matches the PyTorch module
    # after its truncation branch).  1/sqrt(S) must stay in-kernel (S dynamic).
    inv_sqrt_s = 1.0 / math.sqrt(seq_len)
    kp = jnp.dot(pkt_ref[...], hk, preferred_element_type=jnp.float32) * inv_sqrt_s
    vp = jnp.dot(pvt_ref[...], hv, preferred_element_type=jnp.float32) * inv_sqrt_s
    k_proj = kp.shape[0]

    # ---- Head-batched attention: one relayout per operand, two batched
    # dot_generals (head axis is an MXU batch dim), no per-head loop/concat.
    q3 = q.astype(jnp.bfloat16).reshape(seq_len, num_heads, head_dim)
    q3 = q3.transpose(1, 0, 2)                             # (nh, S, hd)
    k3 = kp.astype(jnp.bfloat16).reshape(k_proj, num_heads, head_dim)
    k3 = k3.transpose(1, 0, 2)                             # (nh, K, hd)
    v3 = vp.astype(jnp.bfloat16).reshape(k_proj, num_heads, head_dim)
    v3 = v3.transpose(1, 0, 2)                             # (nh, K, hd)

    dn_scores = (((2,), (2,)), ((0,), (0,)))   # contract hd, batch over heads
    scores = lax.dot_general(q3, k3, dn_scores,
                             preferred_element_type=jnp.float32)   # (nh, S, K)
    scores = scores - jnp.max(scores, axis=-1, keepdims=True)
    # TODO(synk): on v6e/v7x a bf16 exp path is available if profiles show the
    # EUP slot saturating at large S*K; keep f32 exp by default.
    p = jnp.exp(scores)                                            # f32 softmax
    denom = jnp.sum(p, axis=-1, keepdims=True)
    probs = p * pl.reciprocal(denom, approx=True)
    # NOTE: dropout(attention_probs) is identity in eval mode.

    dn_ctx = (((2,), (1,)), ((0,), (0,)))      # contract K, batch over heads
    ctx = lax.dot_general(probs.astype(jnp.bfloat16), v3, dn_ctx,
                          preferred_element_type=jnp.float32)      # (nh, S, hd)

    # Merge heads and do a single lane-dense store of the full (S, H) slab.
    out_ref[0] = ctx.transpose(1, 0, 2).reshape(seq_len, hidden).astype(out_ref.dtype)


def prepare_params(params, *, num_heads):
    """One-time weight preparation (outside the per-call path)."""
    hidden = params["wq"].shape[0]
    head_dim = hidden // num_heads
    inv_sqrt_d = 1.0 / math.sqrt(head_dim)
    # Fold the attention scale into Wq / bq (prep-time, not a per-call op).
    wqkv = jnp.concatenate(
        [params["wq"].T * inv_sqrt_d, params["wk"].T, params["wv"].T], axis=1
    ).astype(jnp.bfloat16)                                   # (H, 3H)
    bqkv = jnp.concatenate(
        [params["bq"] * inv_sqrt_d, params["bk"], params["bv"]]
    ).reshape(1, -1).astype(jnp.float32)                     # (1, 3H)
    return {
        "wqkv": wqkv,
        "bqkv": bqkv,
        "proj_k_t": params["proj_k"].T.astype(jnp.bfloat16),  # (K, max_pos)
        "proj_v_t": params["proj_v"].T.astype(jnp.bfloat16),  # (K, max_pos)
    }


def _vmem_limit_bytes(S, H, K, num_heads):
    """Explicit VMEM budget from the actual per-step footprint (+ margin)."""
    head_dim = H // num_heads
    est = 0
    est += 2 * (S * H * 4)            # x tile, f32, double-buffered
    est += 2 * (S * H * 4)            # out tile, f32, double-buffered
    est += H * 3 * H * 2              # fused wqkv, bf16, single-buffered
    est += 3 * H * 4                  # fused bias, f32
    est += 2 * (K * S * 2)            # pkt + pvt, bf16, single-buffered
    est += S * 3 * H * (4 + 2)        # qkv intermediate (f32 + bf16 copies)
    est += 2 * (K * H * (4 + 2))      # kp / vp (+ bf16 copies)
    est += 3 * (num_heads * S * K * 4)         # scores / p / probs
    est += 2 * (num_heads * S * head_dim * 4)  # ctx (+ relayout)
    est = int(est * 1.5) + (2 << 20)  # margin for compiler scratch / relayouts
    # Floor at 16 MiB (harmless), cap at 64 MiB so the budget is legal on v7x.
    return max(min(est, 64 << 20), 16 << 20)


def linformer_self_attention(hidden_states, prepared, *, num_heads):
    """hidden_states: (B, S, H) float32. prepared: output of prepare_params."""
    B, S, H = hidden_states.shape
    head_dim = H // num_heads

    # Truncation branch (seq_len < max_position_embeddings) on the
    # pre-transposed projections: take the first S columns.
    pkt = prepared["proj_k_t"][:, :S]            # (K, S)
    pvt = prepared["proj_v_t"][:, :S]            # (K, S)
    K = pkt.shape[0]

    kernel = functools.partial(
        linformer_attention_kernel,
        num_heads=num_heads, head_dim=head_dim, hidden=H,
    )

    # Advisory cost estimate: QKV + 2 seq-projections + scores + probs@v.
    flops = int(2 * B * S * H * (3 * H + 4 * K))
    cost = pl.CostEstimate(
        flops=flops,
        transcendentals=int(B * num_heads * S * K),
        bytes_accessed=int(
            hidden_states.size * 4                 # x (f32)
            + prepared["wqkv"].size * 2            # fused weights (bf16)
            + prepared["bqkv"].size * 4            # fused bias (f32)
            + (pkt.size + pvt.size) * 2            # projections (bf16)
            + B * S * H * 4                        # output (f32)
        ),
    )

    # Constant-index (grid-invariant) weights: single-buffered so they are not
    # double-resident in VMEM — their block never changes across the grid.
    def resident(shape):
        return pl.BlockSpec(shape, lambda b: (0,) * len(shape),
                            pipeline_mode=pl.Buffered(buffer_count=1))

    # TODO(synk): at realistic sizes on v7x (64 MiB VMEM) add an "arbitrary"
    # contraction grid axis over H for the fused QKV matmul (f32 VMEM
    # accumulator) and/or tile S; the toy/moderate shapes here fit as-is.
    # TODO(synk): for B == 1 (or odd B) on v7x, add a second "parallel" axis
    # over head groups (re-order the fused weight head-major in prepare_params)
    # so both TensorCores get work.
    return pl.pallas_call(
        kernel,
        out_shape=jax.ShapeDtypeStruct((B, S, H), jnp.float32),
        grid_spec=pltpu.PrefetchScalarGridSpec(
            num_scalar_prefetch=0,
            grid=(B,),   # one batch element per step; "parallel" -> megacore
            in_specs=[
                pl.BlockSpec((1, S, H), lambda b: (b, 0, 0)),  # hidden_states
                resident((H, 3 * H)),   # fused QKV weight (bf16)
                resident((1, 3 * H)),   # fused QKV bias (f32)
                resident((K, S)),       # proj_k^T (bf16)
                resident((K, S)),       # proj_v^T (bf16)
            ],
            out_specs=pl.BlockSpec((1, S, H), lambda b: (b, 0, 0)),
        ),
        compiler_params=pltpu.CompilerParams(
            dimension_semantics=("parallel",),
            vmem_limit_bytes=_vmem_limit_bytes(S, H, K, num_heads),
        ),
        cost_estimate=cost,
    )(hidden_states, prepared["wqkv"], prepared["bqkv"], pkt, pvt)


def linformer_reference(hidden_states, params, *, num_heads):
    """Plain-JAX f32 reference mirroring the PyTorch forward (mask/head_mask None)."""
    B, S, H = hidden_states.shape
    hd = H // num_heads
    x = hidden_states
    q = x @ params["wq"].T + params["bq"]
    hk = x @ params["wk"].T + params["bk"]
    hv = x @ params["wv"].T + params["bv"]
    pk = params["proj_k"][:S]
    pv = params["proj_v"][:S]
    hk = jnp.einsum("bsh,sk->bkh", hk, pk) / math.sqrt(S)
    hv = jnp.einsum("bsh,sk->bkh", hv, pv) / math.sqrt(S)

    def split(t):  # (B, L, H) -> (B, nh, L, hd)
        return t.reshape(t.shape[0], t.shape[1], num_heads, hd).transpose(0, 2, 1, 3)

    qh, kh, vh = split(q), split(hk), split(hv)
    scores = jnp.einsum("bnsd,bnkd->bnsk", qh, kh) / math.sqrt(hd)
    probs = jax.nn.softmax(scores, axis=-1)
    ctx = jnp.einsum("bnsk,bnkd->bnsd", probs, vh)
    return ctx.transpose(0, 2, 1, 3).reshape(B, S, H)


if __name__ == "__main__":
    # Small config consistent with the module:
    #   hidden_size=32, num_attention_heads=4 (head_dim=8),
    #   max_position_embeddings=16, Linformer k=8, batch=2, seq=8 (< max_pos,
    #   so the proj_k/proj_v truncation branch is exercised).
    # NOTE: these toy lane widths (H=32, K=8) force masked partial stores and
    # under-filled vregs — benchmark with H, K multiples of 128 for real perf.
    B, S, H = 2, 8, 32
    NUM_HEADS = 4
    MAX_POS = 16
    K_PROJ = 8

    key = jax.random.PRNGKey(0)
    keys = jax.random.split(key, 10)

    params = {
        "wq": jax.random.normal(keys[0], (H, H), jnp.float32) * 0.1,
        "bq": jax.random.normal(keys[1], (H,), jnp.float32) * 0.1,
        "wk": jax.random.normal(keys[2], (H, H), jnp.float32) * 0.1,
        "bk": jax.random.normal(keys[3], (H,), jnp.float32) * 0.1,
        "wv": jax.random.normal(keys[4], (H, H), jnp.float32) * 0.1,
        "bv": jax.random.normal(keys[5], (H,), jnp.float32) * 0.1,
        # nn.init.normal_(std=1.0) on (max_position_embeddings, k)
        "proj_k": jax.random.normal(keys[6], (MAX_POS, K_PROJ), jnp.float32),
        "proj_v": jax.random.normal(keys[7], (MAX_POS, K_PROJ), jnp.float32),
    }

    hidden_states = jax.random.normal(keys[8], (B, S, H), jnp.float32)

    prepared = prepare_params(params, num_heads=NUM_HEADS)
    out = linformer_self_attention(hidden_states, prepared, num_heads=NUM_HEADS)
    out = jax.block_until_ready(out)

    ref = linformer_reference(hidden_states, params, num_heads=NUM_HEADS)
    assert out.shape == (B, S, H)
    # bf16 MXU inputs + approx reciprocal -> ~1e-2-level error vs f32 reference.
    assert jnp.allclose(out, ref, rtol=5e-2, atol=5e-2), "mismatch vs reference"

    # TODO(synk): attention_mask branch (per-sample variable-length projection)
    # is data-dependent ragged compute and is not implemented (mask=None path only).
    print("KERNEL_OK")
</pallas_src>

<mosaic_0001>
module attributes {stable_mosaic.version = 11 : i64} {
  func.func @linformer_attention_kernel(%arg0: i32, %arg1: memref<1x8x32xf32, #tpu.memory_space<vmem>>, %arg2: memref<32x96xbf16, #tpu.memory_space<vmem>>, %arg3: memref<1x96xf32, #tpu.memory_space<vmem>>, %arg4: memref<8x8xbf16, #tpu.memory_space<vmem>>, %arg5: memref<8x8xbf16, #tpu.memory_space<vmem>>, %arg6: memref<1x8x32xf32, #tpu.memory_space<vmem>>) attributes {dimension_semantics = [#tpu.dimension_semantics<parallel>], iteration_bounds = array<i64: 2>, scalar_prefetch = 0 : i64, scratch_operands = 0 : i64, tpu.core_type = #tpu.core_type<tc>, window_params = [{transform_indices = @transform_0, window_bounds = array<i64: 1, 8, 32>}, {pipeline_mode = #tpu.pipeline_mode<synchronous>, transform_indices = @transform_1, window_bounds = array<i64: 32, 96>}, {pipeline_mode = #tpu.pipeline_mode<synchronous>, transform_indices = @transform_2, window_bounds = array<i64: 1, 96>}, {pipeline_mode = #tpu.pipeline_mode<synchronous>, transform_indices = @transform_3, window_bounds = array<i64: 8, 8>}, {pipeline_mode = #tpu.pipeline_mode<synchronous>, transform_indices = @transform_4, window_bounds = array<i64: 8, 8>}, {transform_indices = @transform_5, window_bounds = array<i64: 1, 8, 32>}]} {
    %c0 = arith.constant 0 : index
    %c0_0 = arith.constant 0 : index
    %c0_1 = arith.constant 0 : index
    %0 = vector.load %arg1[%c0, %c0_0, %c0_1] : memref<1x8x32xf32, #tpu.memory_space<vmem>>, vector<1x8x32xf32>
    %1 = vector.shape_cast %0 : vector<1x8x32xf32> to vector<8x32xf32>
    %2 = arith.truncf %1 : vector<8x32xf32> to vector<8x32xbf16>
    %c0_2 = arith.constant 0 : index
    %c0_3 = arith.constant 0 : index
    %3 = vector.load %arg2[%c0_2, %c0_3] : memref<32x96xbf16, #tpu.memory_space<vmem>>, vector<32x96xbf16>
    %cst = arith.constant dense<0.000000e+00> : vector<8x96xf32>
    %4 = tpu.matmul %2, %3, %cst {dimension_numbers = #tpu.dot_dimension_numbers<[1], [0], [0], [1], [0, 0, 1, 1], [], []>} : vector<8x32xbf16>, vector<32x96xbf16>, vector<8x96xf32> -> vector<8x96xf32>
    %c0_4 = arith.constant 0 : index
    %c0_5 = arith.constant 0 : index
    %5 = vector.load %arg3[%c0_4, %c0_5] : memref<1x96xf32, #tpu.memory_space<vmem>>, vector<1x96xf32>
    %6 = vector.broadcast %5 : vector<1x96xf32> to vector<8x96xf32>
    %7 = arith.addf %4, %6 : vector<8x96xf32>
    %8 = vector.extract_strided_slice %7 {offsets = [0, 0], sizes = [8, 32], strides = [1, 1]} : vector<8x96xf32> to vector<8x32xf32>
    %9 = vector.extract_strided_slice %7 {offsets = [0, 32], sizes = [8, 32], strides = [1, 1]} : vector<8x96xf32> to vector<8x32xf32>
    %10 = arith.truncf %9 : vector<8x32xf32> to vector<8x32xbf16>
    %11 = vector.extract_strided_slice %7 {offsets = [0, 64], sizes = [8, 32], strides = [1, 1]} : vector<8x96xf32> to vector<8x32xf32>
    %12 = arith.truncf %11 : vector<8x32xf32> to vector<8x32xbf16>
    %c0_6 = arith.constant 0 : index
    %c0_7 = arith.constant 0 : index
    %13 = vector.load %arg4[%c0_6, %c0_7] : memref<8x8xbf16, #tpu.memory_space<vmem>>, vector<8x8xbf16>
    %cst_8 = arith.constant dense<0.000000e+00> : vector<8x32xf32>
    %14 = tpu.matmul %13, %10, %cst_8 {dimension_numbers = #tpu.dot_dimension_numbers<[1], [0], [0], [1], [0, 0, 1, 1], [], []>} : vector<8x8xbf16>, vector<8x32xbf16>, vector<8x32xf32> -> vector<8x32xf32>
    %cst_9 = arith.constant 0.353553385 : f32
    %15 = vector.broadcast %cst_9 : f32 to vector<8x32xf32>
    %16 = arith.mulf %14, %15 : vector<8x32xf32>
    %c0_10 = arith.constant 0 : index
    %c0_11 = arith.constant 0 : index
    %17 = vector.load %arg5[%c0_10, %c0_11] : memref<8x8xbf16, #tpu.memory_space<vmem>>, vector<8x8xbf16>
    %cst_12 = arith.constant dense<0.000000e+00> : vector<8x32xf32>
    %18 = tpu.matmul %17, %12, %cst_12 {dimension_numbers = #tpu.dot_dimension_numbers<[1], [0], [0], [1], [0, 0, 1, 1], [], []>} : vector<8x8xbf16>, vector<8x32xbf16>, vector<8x32xf32> -> vector<8x32xf32>
    %cst_13 = arith.constant 0.353553385 : f32
    %19 = vector.broadcast %cst_13 : f32 to vector<8x32xf32>
    %20 = arith.mulf %18, %19 : vector<8x32xf32>
    %21 = arith.truncf %8 : vector<8x32xf32> to vector<8x32xbf16>
    %22 = vector.shape_cast %21 : vector<8x32xbf16> to vector<8x4x8xbf16>
    %23 = tpu.transpose %22, [1, 0, 2] : vector<8x4x8xbf16> -> vector<4x8x8xbf16>
    %24 = arith.truncf %16 : vector<8x32xf32> to vector<8x32xbf16>
    %25 = vector.shape_cast %24 : vector<8x32xbf16> to vector<8x4x8xbf16>
    %26 = tpu.transpose %25, [1, 0, 2] : vector<8x4x8xbf16> -> vector<4x8x8xbf16>
    %27 = arith.truncf %20 : vector<8x32xf32> to vector<8x32xbf16>
    %28 = vector.shape_cast %27 : vector<8x32xbf16> to vector<8x4x8xbf16>
    %29 = tpu.transpose %28, [1, 0, 2] : vector<8x4x8xbf16> -> vector<4x8x8xbf16>
    %cst_14 = arith.constant dense<0.000000e+00> : vector<4x8x8xf32>
    %30 = tpu.matmul %23, %26, %cst_14 {dimension_numbers = #tpu.dot_dimension_numbers<[2], [2], [1], [1], [0, 0, 0, 1, 1, 1], [0], [0]>} : vector<4x8x8xbf16>, vector<4x8x8xbf16>, vector<4x8x8xf32> -> vector<4x8x8xf32>
    %cst_15 = arith.constant dense<0xFF800000> : vector<4x8xf32>
    %31 = vector.multi_reduction <maximumf>, %30, %cst_15 [2] : vector<4x8x8xf32> to vector<4x8xf32>
    %32 = vector.shape_cast %31 : vector<4x8xf32> to vector<4x8x1xf32>
    %33 = vector.broadcast %32 : vector<4x8x1xf32> to vector<4x8x8xf32>
    %34 = arith.subf %30, %33 : vector<4x8x8xf32>
    %35 = math.exp %34 : vector<4x8x8xf32>
    %cst_16 = arith.constant dense<0.000000e+00> : vector<4x8xf32>
    %36 = vector.multi_reduction <add>, %35, %cst_16 [2] : vector<4x8x8xf32> to vector<4x8xf32>
    %37 = vector.shape_cast %36 : vector<4x8xf32> to vector<4x8x1xf32>
    %38 = tpu.reciprocal %37 {approx = true} : vector<4x8x1xf32> -> vector<4x8x1xf32>
    %39 = vector.broadcast %38 : vector<4x8x1xf32> to vector<4x8x8xf32>
    %40 = arith.mulf %35, %39 : vector<4x8x8xf32>
    %41 = arith.truncf %40 : vector<4x8x8xf32> to vector<4x8x8xbf16>
    %cst_17 = arith.constant dense<0.000000e+00> : vector<4x8x8xf32>
    %42 = tpu.matmul %41, %29, %cst_17 {dimension_numbers = #tpu.dot_dimension_numbers<[2], [1], [1], [2], [0, 0, 0, 1, 1, 2], [0], [0]>} : vector<4x8x8xbf16>, vector<4x8x8xbf16>, vector<4x8x8xf32> -> vector<4x8x8xf32>
    %43 = tpu.transpose %42, [1, 0, 2] : vector<4x8x8xf32> -> vector<8x4x8xf32>
    %44 = vector.shape_cast %43 : vector<8x4x8xf32> to vector<8x32xf32>
    %c0_18 = arith.constant 0 : index
    %c0_19 = arith.constant 0 : index
    %c0_20 = arith.constant 0 : index
    %45 = vector.load %arg6[%c0_18, %c0_19, %c0_20] : memref<1x8x32xf32, #tpu.memory_space<vmem>>, vector<1x8x32xf32>
    %46 = vector.shape_cast %45 : vector<1x8x32xf32> to vector<8x32xf32>
    %47 = vector.shape_cast %44 : vector<8x32xf32> to vector<1x8x32xf32>
    tpu.vector_store %arg6[%c0_18, %c0_19, %c0_20], %47 {strides = array<i32>} : memref<1x8x32xf32, #tpu.memory_space<vmem>>, vector<1x8x32xf32>,
    return
  }
  func.func @transform_0(%arg0: i32) -> (i32, i32, i32) {
    %c0_i32 = arith.constant 0 : i32
    %c0_i32_0 = arith.constant 0 : i32
    %c0_i32_1 = arith.constant 0 : i32
    return %arg0, %c0_i32, %c0_i32_0 : i32, i32, i32
  }
  func.func @transform_1(%arg0: i32) -> (i32, i32) {
    %c0_i32 = arith.constant 0 : i32
    %c0_i32_0 = arith.constant 0 : i32
    %c0_i32_1 = arith.constant 0 : i32
    return %c0_i32, %c0_i32_0 : i32, i32
  }
  func.func @transform_2(%arg0: i32) -> (i32, i32) {
    %c0_i32 = arith.constant 0 : i32
    %c0_i32_0 = arith.constant 0 : i32
    %c0_i32_1 = arith.constant 0 : i32
    return %c0_i32, %c0_i32_0 : i32, i32
  }
  func.func @transform_3(%arg0: i32) -> (i32, i32) {
    %c0_i32 = arith.constant 0 : i32
    %c0_i32_0 = arith.constant 0 : i32
    %c0_i32_1 = arith.constant 0 : i32
    return %c0_i32, %c0_i32_0 : i32, i32
  }
  func.func @transform_4(%arg0: i32) -> (i32, i32) {
    %c0_i32 = arith.constant 0 : i32
    %c0_i32_0 = arith.constant 0 : i32
    %c0_i32_1 = arith.constant 0 : i32
    return %c0_i32, %c0_i32_0 : i32, i32
  }
  func.func @transform_5(%arg0: i32) -> (i32, i32, i32) {
    %c0_i32 = arith.constant 0 : i32
    %c0_i32_0 = arith.constant 0 : i32
    %c0_i32_1 = arith.constant 0 : i32
    return %arg0, %c0_i32, %c0_i32_0 : i32, i32, i32
  }
}

</mosaic_0001>

<bundles_post_ra>
// kernel: tpu_custom_call.1
= control target key start
LH: loop header
LB: loop body
LE: loop exit
PB: predicated region body
PF: predicated region fallthrough
CT: control target
= control target key end

     0   :  { %10 = vsyncpa [#allocation3], 0  ;;  %s2366_s0 = inlined_call_operand.hbm [shape: f32[2,8,32], index: 0, kind: input, shape index: {}]   ;;  %s2367_s1 = inlined_call_operand.hbm [shape: bf16[32,96], index: 1, kind: input, shape index: {}]   ;;  %s2368_s2 = inlined_call_operand.vmem [shape: f32[1,96], index: 2, kind: input, shape index: {}]   ;;  %s2369_s3 = inlined_call_operand.vmem [shape: bf16[8,8], index: 3, kind: input, shape index: {}]   ;;  %s2370_s4 = inlined_call_operand.vmem [shape: bf16[8,8], index: 4, kind: input, shape index: {}]   ;;  %s2371_s5 = inlined_call_operand.hbm [shape: f32[2,8,32], index: 5, kind: output, shape index: {}]  }
   0x1   :  { %12 = vsyncpa [#allocation3 + $0x1], 0 }
   0x2   :  { %13 = vsyncpa [#allocation6], 0 }
   0x3   :  { %14 = vsyncpa [#allocation4], 0 }
   0x4   :  { %16 = vsyncpa [#allocation4 + $0x1], 0  ;;  %s1987_s18 = smov 0   ;;  %s1989_s19 = smov 0  }
   0x5   :  { %s1991_s20 = smov 0   ;;  %s1993_s21 = smov 0  }
   0x6 LB: > { %s2008_s22 = sadd.s32 4294967295, %s1937_s21   ;;  %s1598_s23 = sadd.s32 4294967294, %s1937_s21   ;;  %s1937_s21 = sphi %s1993_s21, %s2391_s21   ;;  %s1933_s20 = sphi %s1991_s20, %s2390_s20   ;;  %s1929_s19 = sphi %s1989_s19, %s2389_s19   ;;  %s1925_s18 = sphi %s1987_s18, %s2388_s18  }
   0x7   : > { %p42_p0 = scmp.ne.s32.totalorder %s1929_s19, %s1925_s18  ;;  %p2372_p1 = scmp.eq.s32.totalorder %s2008_s22, 0 }
   0x8   : > { %p156_p3 = scmp.eq.s32.totalorder %s1598_s23, 1  ;;  %p1599_p5 = scmp.ge.s32.totalorder %s1937_s21, 1 }
   0x9   : > { %p2017_p4 = por %p2372_p1, %p42_p0  ;;  %p163_p7 = scmp.lt.s32.totalorder %s1937_s21, 3 }
   0xa   : > { %p2022_p6 = por %p156_p3, %p42_p0  ;;  %s1939_s27 = smov [#allocation5]  }
   0xb   : > { %s2375_s24 = scalar_select %p2017_p4, 1, 0 }
   0xc   : > { %s2376_s25 = scalar_select %p2022_p6, 1, 0 }
   0xd   : > { %p2027_p8 = pnand %p1599_p5, %p163_p7  ;;  %s175_s28 = sshll.u32 %s1939_s27, 4  ;;  %s2031_s28 = int_to_ptr.vmem [resolvable:$true] %s175_s28 }
   0xe   : > { %s2043_s30 = sadd.s32 1, %s1937_s21   ;;  %s29_s6 = sadd.s32 1, %s1933_s20 }
   0xf   : > { %s2377_s26 = scalar_select %p2027_p8, 1, 0 }
  0x10   : > { %p1727_p9 = pneg %p2027_p8  ;;  %s26_s7 = ssub.s32 %s1937_s21, %s2043_s30 }
  0x11   : > { %s1809_s10 = scalar_lea.hbm %s2367_s1, 256 }
  0x12   : > { %p2038_p11 = pnand %p1727_p9, %p2372_p1  ;;  %p1810_p12 = scmp.ne.s32.totalorder %s2367_s1, %s1809_s10 }
  0x13   : > { %p1816_p5 = scmp.lt.u32.totalorder %s1809_s10, %s2367_s1 }
  0x14   : > { %p1811_p13 = pneg %p2038_p11 }
  0x16   : > { %p1812_p0 = pnand %p1811_p13, %p1810_p12 }
  0x18   : > { %p1813_p3 = pneg %p1812_p0 }
  0x1a   : > { %p1818_p7 = pnand %p1816_p5, %p1813_p3 }
  0x1c   : > { %1821 = shalt.err (!%p1818_p7)
}
  0x1d   : > { %s1822_s15 = scalar_lea.vmem %s2031_s28, 256  ;;  %p1830_p2 = scmp.lt.s32.totalorder %s2031_s28, %s2031_s28 }
  0x1e   : > { %p1823_p9 = scmp.ne.s32.totalorder %s2031_s28, %s1822_s15  ;;  %p1831_p6 = scmp.lt.s32.totalorder %s1822_s15, %s1822_s15 }
  0x20   : > { %p1825_p10 = pnand %p1823_p9, %p1811_p13  ;;  %p1832_p4 = por %p1831_p6, %p1830_p2 }
  0x22   : > { %p1826_p1 = pneg %p1825_p10 }
  0x24   : > { %p1833_p8 = pnand %p1832_p4, %p1826_p1 }
  0x26   : > { %1836 = shalt.err (!%p1833_p8)
}
  0x27   : > { %s1940_s16 = smov 64   ;;  %s1941_s17 = smov 4  }
  0x28   : > { %1730 = dma.hbm_to_vmem [thread:$0]  (!%p2038_p11), %s2367_s1, 256, %s2031_s28, [#allocation6], %s1940_s16, %s1940_s16, %s1941_s17  }
  0x29   : > { %p27_p2 = scmp.eq.s32.totalorder %s26_s7, 0  ;;  %p36_p1 = scmp.ne.s32.totalorder %s1933_s20, %s1929_s19 }
  0x2a   : > { %p37_p4 = scmp.eq.s32.totalorder %s1937_s21, 0  ;;  %p1740_p6 = scmp.lt.s32.totalorder %s1937_s21, 2 }
  0x2b   : > { %s2074_s8 = scalar_select %p27_p2, %s1933_s20, %s29_s6  }
  0x2c   : > { %p38_p8 = por %p37_p4, %p36_p1  ;;  %p2379_p10 = scmp.eq.s32.totalorder %s2008_s22, 1 }
  0x2d   : > { %s198_s10 = sand.u32 1, %s1933_s20   ;;  %s1603_s11 = sshll.u32 %s1937_s21, 7 }
  0x2e   : > { %p2078_p12 = por %p2379_p10, %p36_p1  ;;  %s1602_s12 = sshll.u32 %s198_s10, 3 }
  0x2f   : > { %s2087_s14 = scalar_lea.hbm %s2366_s0, %s1603_s11  ;;  %s202_s28 = scalar_lea.vmem [#allocation2], %s1602_s12 }
  0x30   : > { %s209_s6 = sshll.u32 %s202_s28, 4  ;;  %p2089_p11 = pnand %p1740_p6, %p38_p8  ;;  %s2093_s6 = int_to_ptr.vmem [resolvable:$true] %s209_s6 }
  0x31   : > { %s199_s15 = scalar_lea.sflag [#allocation3], %s198_s10  ;;  %s1837_s16 = scalar_lea.hbm %s2087_s14, 128 }
  0x32   : > { %p1838_p13 = scmp.ne.s32.totalorder %s2087_s14, %s1837_s16  ;;  %p1839_p0 = pneg %p2089_p11 }
  0x33   : > { %s1842_s27 = scalar_lea.hbm %s2366_s0, 256  ;;  %p1843_p7 = scmp.lt.u32.totalorder %s2087_s14, %s2366_s0 }
  0x34   : > { %p1840_p3 = pnand %p1839_p0, %p1838_p13  ;;  %p1844_p9 = scmp.lt.u32.totalorder %s1842_s27, %s1837_s16 }
  0x35   : > { %p1846_p1 = scmp.lt.u32.totalorder %s1837_s16, %s2087_s14 }
  0x36   : > { %p1841_p5 = pneg %p1840_p3  ;;  %p1845_p2 = por %p1844_p9, %p1843_p7 }
  0x38   : > { %p1847_p4 = por %p1846_p1, %p1845_p2 }
  0x3a   : > { %p1848_p6 = pnand %p1847_p4, %p1841_p5 }
  0x3c   : > { %1851 = shalt.err (!%p1848_p6)
}
  0x3d   : > { %s1852_s10 = scalar_lea.vmem %s2093_s6, 128  ;;  %s1942_s29 = smov [#allocation2]  }
  0x3e   : > { %p1853_p8 = scmp.ne.s32.totalorder %s2093_s6, %s1852_s10  ;;  %s1857_s13 = sshll.u32 %s1942_s29, 4  ;;  %s1858_s13 = int_to_ptr.vmem [resolvable:$false] %s1857_s13 }
  0x3f   : > { %s1859_s28 = scalar_lea.vmem %s1858_s13, 256  ;;  %p1860_p3 = scmp.lt.s32.totalorder %s2093_s6, %s1858_s13 }
  0x40   : > { %p1855_p10 = pnand %p1853_p8, %p1839_p0  ;;  %p1861_p7 = scmp.lt.s32.totalorder %s1859_s28, %s1852_s10 }
  0x42   : > { %p1856_p13 = pneg %p1855_p10  ;;  %p1862_p9 = por %p1861_p7, %p1860_p3 }
  0x44   : > { %p1863_p2 = pnand %p1862_p9, %p1856_p13 }
  0x46   : > { %1866 = shalt.err (!%p1863_p2)
}
  0x47   : > { %1734 = dma.hbm_to_vmem [thread:$0]  (!%p2089_p11), %s2087_s14, 128, %s2093_s6, %s199_s15  }
  0x48   : > { %p2382_p5 = scmp.ne.s32.totalorder %s2377_s26, 0 }
  0x49   : > { %s2123_s16 = sand.u32 (!%p2382_p5), 1, %s1929_s19   ;;  %p2383_p0 = scmp.ne.s32.totalorder (!%p2382_p5), %s2375_s24, 0 }
  0x4a   : > { %218 = sbr.rel (%p2382_p5) target bundleno = 1745 (0x6d1), region = 40  ;;  %s1605_s17 = sshll.u32 (!%p2382_p5), %s2123_s16, 3 }
  0x4b   : > { %s221_s23 = scalar_lea.sflag (!%p2382_p5), [#allocation3], %s2123_s16  ;;  %s224_s27 = scalar_lea.vmem (!%p2382_p5), [#allocation2], %s1605_s17 }
  0x51   : > { %1912 = dma.done.wait (%p2383_p0), %s221_s23, 128  }
  0x52   : > { %1914 = vsyncadd (%p2383_p0), %s221_s23, 4294967168  ;;  %p2384_p11 = scmp.eq.s32.totalorder %s2008_s22, 0 }
  0x54   : > { %1916 = dma.done.wait (%p2384_p11), [#allocation6], 256   ;;  %p2385_p1 = pmov %p2384_p11 }
  0x55   : > { %v1943_v0 = vmov 0.0   ;;  %vm1944_vm0 = vmmov 0   ;;  %v1791_v1 = vld [vmem:[#allocation5] sm:$0xff]   ;;  %v1792_v2 = vld [vmem:[#allocation5 + $0x8] sm:$0xff]   ;;  %v256_v3 = vld [vmem:[%s224_s27] sm:$0xff]  ;;  %vm281_vm1 = vcmask 261120   ;;  %v438_v23 = vlaneseq }
  0x56   : > { %1918 = vsyncadd (%p2385_p1), [#allocation6], 4294967040  ;;  %1651 = vmatprep.subr.bf16.mxu0 %v1943_v0  ;;  %1655 = vmatprep.mubr.msk.bf16.mxu0 %vm1944_vm0, %v1943_v0  ;;  %v257_v4 = vpack.c.bf16 %v256_v3, %v256_v3  ;;  %v1608_v5 = vld [vmem:[%s2368_s2] ss:$0 sm:$0xff]  ;;  %s1945_s14 = smov 96   ;;  %vm334_vm2 = vcmask 1043456  }
  0x57   : > { %1659 = vmatprep.subr.bf16.mxu1 %v1943_v0  ;;  %1661 = vmatprep.mubr.msk.bf16.mxu1 %vm1944_vm0, %v1943_v0  ;;  %v326_v14 = vld [vmem:[%s2369_s3] sm:$0xf]  ;;  %vm330_vm3 = vcmask 64512   ;;  %s1946_s15 = smov 112   ;;  %s1947_s11 = smov 120   ;;  %v439_v27 = vshrl.u32 %v438_v23, 7 }
  0x58   : > { %1652 = vmatpush3.bf16.msra.mxu0 %v1791_v1  ;;  %s1948_s12 = smov 104   ;;  %s1949_s10 = smov 64   ;;  %v1950_v21 = vmov 1983009808   ;;  %v1951_v24 = vmov 1934713408  }
  0x59   : > { %1653 = vmatprep.subr.bf16.mxu0 %v1943_v0  ;;  %v436_v22 = vunpack.c.l.s4 %v1950_v21  ;;  %v453_v25 = vunpack.c.l.s4 %v1951_v24  ;;  %v1952_v43 = vmov 0   ;;  %s1953_s28 = smov 16   ;;  %s1954_s23 = smov 8   ;;  %vm1499_vm4 = vcmask 130048  }
  0x5a   : > { %s1955_s27 = smov 24   ;;  %s1625_s24 = sshll.u32 %s2008_s22, 7  ;;  %vm1501_vm5 = vcmask 195584  }
  0x5b   : > { %v437_v26 = vunpack.c.0.s8 %v436_v22  ;;  %v454_v28 = vunpack.c.0.s8 %v453_v25  ;;  %s254_s26 = scalar_lea.vmem [#allocation7], %s1605_s17  ;;  %s1505_s22 = scalar_lea.sflag [#allocation4], %s2123_s16 }
  0x5c   : > { %1654 = vmatpush3.bf16.msra.mxu0 %v1792_v2  ;;  %s1956_s17 = smov [#allocation7]  }
  0x5d   : > { %1671 = vmatprep.subr.bf16.mxu0 %v1943_v0  ;;  %v2165_v29 = vsub.s32 %v437_v26, %v439_v27  ;;  %v2167_v32 = vsub.s32 %v454_v28, %v439_v27 }
  0x5f   : > { %1656 = vmatmul.mubr.msk.bf16.vlgmr.msra.gmra.mrb[0].mxu0 %vm281_vm1, %v257_v4 }
  0x60   : > { %1673 = vmatprep.mubr.msk.bf16.mxu0 %vm1944_vm0, %v1943_v0 }
 0x132   : > { %v319_v6 = vpop.f32.mrb[0].mxu0 }
 0x133   : > { %v320_v7 = vadd.f32 %v1608_v5, %v319_v6  ;;  %v1657_v8 = vpop.f32.mrb[1].mxu0 }
 0x134   : > { %v322_v9 = vpop.f32.mrb[2].mxu0 }
 0x135   : > { %v325_v10 = vpack.c.bf16 %v320_v7, %v320_v7  ;;  %v1658_v11 = vpop.f32.mrb[3].mxu0 }
 0x137   : > { %328 = vrot.lane.b32.xlu0 %v325_v10, %s1945_s14  ;;  %v441_v50 = vrot.slane %v325_v10, %v2165_v29  ;;  %s1518_s14 = sshll.u32 %s254_s26, 4  ;;  %s2323_s14 = int_to_ptr.vmem [resolvable:$true] %s1518_s14 }
 0x1a9   : > { %v329_v12 = vpop.permute.xlu0 %328 }
 0x1aa   : > { %v336_v13 = vsel %vm334_vm2, %v329_v12, 0 }
 0x1ab   : > { %1660 = vmatpush3.bf16.msra.mxu1 %v336_v13 }
 0x1ac   : > { %1665 = vmatprep.subr.bf16.mxu1 %v1943_v0 }
 0x1ae   : > { %1662 = vmatmul.mubr.msk.bf16.vlgmr.msra.gmra.mrb[0].mxu1 %vm330_vm3, %v326_v14 }
 0x1af   : > { %1667 = vmatprep.mubr.msk.bf16.mxu1 %vm1944_vm0, %v1943_v0 }
 0x281   : > { %v372_v15 = vpop.f32.mrb[0].mxu1 }
 0x282   : > { %v378_v16 = vmul.f32 0.35355338, %v372_v15  ;;  %v1663_v17 = vpop.f32.mrb[1].mxu1 }
 0x283   : > { %v375_v18 = vpop.f32.mrb[2].mxu1 }
 0x284   : > { %v596_v19 = vpack.c.bf16 %v378_v16, %v378_v16  ;;  %v1664_v20 = vpop.f32.mrb[3].mxu1 }
 0x286   : > { %600 = vrot.lane.b32.xlu1 %v596_v19, %s1946_s15  ;;  %598 = vrot.lane.b32.xlu0 %v596_v19, %s1947_s11  ;;  %v610_v33 = vrot.slane %v596_v19, %v2165_v29 }
 0x28a   : > { %602 = vrot.lane.b32.xlu1 %v596_v19, %s1948_s12  ;;  %429 = vrot.lane.b32.xlu0 %v325_v10, %s1947_s11 }
 0x28e   : > { %431 = vrot.lane.b32.xlu1 %v325_v10, %s1946_s15  ;;  %433 = vrot.lane.b32.xlu0 %v325_v10, %s1948_s12 }
 0x292   : > { %380 = vrot.lane.b32.xlu1 %v325_v10, %s1949_s10 }
 0x2f8   : > { %v601_v30 = vpop.permute.xlu1 %600  ;;  %v599_v31 = vpop.permute.xlu0 %598 }
 0x2f9   : > { %v618_v34 = vrot.slane %v601_v30, %v2165_v29  ;;  %v644_v42 = vrot.slane %v599_v31, %v2165_v29 }
 0x2fb   : > { %v619_v35 = vcombine.low %v610_v33, %v618_v34  ;;  %v620_v36 = vcombine.high %v610_v33, %v618_v34 }
 0x2fc   : > { %v603_v37 = vpop.permute.xlu1 %602  ;;  %v430_v38 = vpop.permute.xlu0 %429 }
 0x2fd   : > { %v627_v39 = vrot.slane %v619_v35, %v2167_v32  ;;  %v634_v40 = vrot.slane %v620_v36, %v2167_v32  ;;  %v652_v41 = vrot.slane %v603_v37, %v2165_v29  ;;  %v475_v48 = vrot.slane %v430_v38, %v2165_v29 }
 0x2ff   : > { %v635_v44 = vcombine.high %v627_v39, %v1952_v43  ;;  %v636_v45 = vcombine.high %v634_v40, %v1952_v43  ;;  %v653_v46 = vcombine.low %v644_v42, %v652_v41  ;;  %v654_v47 = vcombine.high %v644_v42, %v652_v41 }
 0x300   : > { %v432_v49 = vpop.permute.xlu1 %431  ;;  %v434_v51 = vpop.permute.xlu0 %433  ;;  %v675_v52 = vshrl.u32 %v627_v39, 16  ;;  %v691_v53 = vshrl.u32 %v634_v40, 16 }
 0x301   : > { %v449_v54 = vrot.slane %v432_v49, %v2165_v29  ;;  %v483_v55 = vrot.slane %v434_v51, %v2165_v29  ;;  %v683_v56 = vshrl.u32 %v635_v44, 16  ;;  %v699_v57 = vshrl.u32 %v636_v45, 16 }
 0x302   : > { %v661_v58 = vrot.slane %v653_v46, %v2167_v32  ;;  %v668_v59 = vrot.slane %v654_v47, %v2167_v32 }
 0x303   : > { %v450_v60 = vcombine.low %v441_v50, %v449_v54  ;;  %v451_v61 = vcombine.high %v441_v50, %v449_v54  ;;  %v484_v62 = vcombine.low %v475_v48, %v483_v55  ;;  %v485_v63 = vcombine.high %v475_v48, %v483_v55 }
 0x304   : > { %v669_v1 = vcombine.high %v661_v58, %v1952_v43  ;;  %v670_v2 = vcombine.high %v668_v59, %v1952_v43  ;;  %v673_v3 = vpack.i.b16 %v661_v58, %v627_v39  ;;  %v676_v4 = vshrl.u32 %v661_v58, 16  ;;  %v381_v21 = vpop.permute.xlu1 %380 }
 0x305   : > { %v689_v5 = vpack.i.b16 %v668_v59, %v634_v40  ;;  %v692_v6 = vshrl.u32 %v668_v59, 16  ;;  %v458_v7 = vrot.slane %v450_v60, %v2167_v32  ;;  %v465_v8 = vrot.slane %v451_v61, %v2167_v32  ;;  %v379_v40 = vld [vmem:[%s2370_s4] sm:$0xf] }
 0x306   : > { %v677_v9 = vpack.i.b16 %v676_v4, %v675_v52  ;;  %v681_v10 = vpack.i.b16 %v669_v1, %v635_v44  ;;  %v684_v11 = vshrl.u32 %v669_v1, 16  ;;  %v697_v12 = vpack.i.b16 %v670_v2, %v636_v45 }
 0x307   : > { %v693_v13 = vpack.i.b16 %v692_v6, %v691_v53  ;;  %v700_v14 = vshrl.u32 %v670_v2, 16  ;;  %v703_v15 = vcombine.low %v673_v3, %v689_v5  ;;  %v466_v16 = vcombine.high %v458_v7, %v1952_v43 }
 0x308   : > { %v685_v17 = vpack.i.b16 %v684_v11, %v683_v56  ;;  %v711_v18 = vcombine.low %v681_v10, %v697_v12  ;;  %v467_v19 = vcombine.high %v465_v8, %v1952_v43  ;;  %v506_v20 = vshrl.u32 %v458_v7, 16 }
 0x309   : > { %v701_v22 = vpack.i.b16 %v700_v14, %v699_v57  ;;  %v710_v23 = vrot.slane %v703_v15, %v2165_v29  ;;  %v728_v24 = vcombine.low %v677_v9, %v693_v13  ;;  %v514_v25 = vshrl.u32 %v466_v16, 16 }
 0x30a   : > { %v522_v26 = vshrl.u32 %v465_v8, 16  ;;  %v530_v27 = vshrl.u32 %v467_v19, 16  ;;  %v492_v28 = vrot.slane %v484_v62, %v2167_v32  ;;  %v499_v30 = vrot.slane %v485_v63, %v2167_v32 }
 0x30b   : > { %v736_v31 = vcombine.low %v685_v17, %v701_v22  ;;  %v386_v33 = vsel %vm334_vm2, %v381_v21, 0  ;;  %v718_v34 = vrot.slane %v711_v18, %v2165_v29  ;;  %v735_v35 = vrot.slane %v728_v24, %v2165_v29 }
 0x30c   : > { %v500_v36 = vcombine.high %v492_v28, %v1952_v43  ;;  %v501_v37 = vcombine.high %v499_v30, %v1952_v43  ;;  %v504_v38 = vpack.i.b16 %v492_v28, %v458_v7  ;;  %v507_v39 = vshrl.u32 %v492_v28, 16  ;;  %1666 = vmatpush3.bf16.msra.mxu1 %v386_v33 }
 0x30d   : > { %v520_v41 = vpack.i.b16 %v499_v30, %v465_v8  ;;  %v523_v42 = vshrl.u32 %v499_v30, 16  ;;  %v719_v44 = vcombine.low %v710_v23, %v718_v34  ;;  %v743_v45 = vrot.slane %v736_v31, %v2165_v29  ;;  %1677 = vmatprep.subr.bf16.mxu1 %v1943_v0 }
 0x30e   : > { %v508_v46 = vpack.i.b16 %v507_v39, %v506_v20  ;;  %v512_v47 = vpack.i.b16 %v500_v36, %v466_v16  ;;  %v515_v48 = vshrl.u32 %v500_v36, 16  ;;  %v528_v49 = vpack.i.b16 %v501_v37, %v467_v19 }
 0x30f   : > { %v524_v50 = vpack.i.b16 %v523_v42, %v522_v26  ;;  %v531_v51 = vshrl.u32 %v501_v37, 16  ;;  %v534_v52 = vcombine.low %v504_v38, %v520_v41  ;;  %1668 = vmatmul.mubr.msk.bf16.vlgmr.msra.gmra.mrb[4].mxu1 %vm330_vm3, %v379_v40  ;;  %v726_v53 = vrot.slane %v719_v44, %v2167_v32 }
 0x310   : > { %v516_v54 = vpack.i.b16 %v515_v48, %v514_v25  ;;  %v542_v55 = vcombine.low %v512_v47, %v528_v49  ;;  %v744_v56 = vcombine.low %v735_v35, %v743_v45  ;;  %1679 = vmatprep.mubr.msk.bf16.mxu1 %vm1944_vm0, %v1943_v0 }
 0x311   : > { %v532_v57 = vpack.i.b16 %v531_v51, %v530_v27  ;;  %v559_v58 = vcombine.low %v508_v46, %v524_v50  ;;  %v541_v59 = vrot.slane %v534_v52, %v2165_v29  ;;  %v756_v63 = vshrl.u32 %v726_v53, 16 }
 0x312   : > { %v549_v60 = vrot.slane %v542_v55, %v2165_v29  ;;  %v751_v61 = vrot.slane %v744_v56, %v2167_v32  ;;  %v727_v9 = vcombine.high %v726_v53, %v1952_v43 }
 0x313   : > { %v567_v62 = vcombine.low %v516_v54, %v532_v57  ;;  %v566_v5 = vrot.slane %v559_v58, %v2165_v29 }
 0x314   : > { %v550_v1 = vcombine.low %v541_v59, %v549_v60  ;;  %v755_v2 = vpack.i.b16 %v751_v61, %v726_v53  ;;  %v757_v3 = vshrl.u32 %v751_v61, 16  ;;  %v752_v4 = vcombine.high %v751_v61, %v1952_v43 }
 0x315   : > { %v574_v6 = vrot.slane %v567_v62, %v2165_v29  ;;  %v762_v16 = vshrl.u32 %v727_v9, 16 }
 0x316   : > { %v938_v7 = vsel %vm330_vm3, %v755_v2, 0  ;;  %v758_v8 = vpack.i.b16 %v757_v3, %v756_v63  ;;  %v557_v12 = vrot.slane %v550_v1, %v2167_v32  ;;  %v763_v13 = vshrl.u32 %v752_v4, 16 }
 0x317   : > { %v575_v10 = vcombine.low %v566_v5, %v574_v6  ;;  %1672 = vmatpush3.bf16.xpose.msra.mxu0 %v938_v7  ;;  %v761_v15 = vpack.i.b16 %v752_v4, %v727_v9 }
 0x318   : > { %v984_v11 = vsel %vm330_vm3, %v758_v8, 0  ;;  %1683 = vmatprep.subr.bf16.mxu0 %v1943_v0  ;;  %v587_v19 = vshrl.u32 %v557_v12, 16  ;;  %v764_v20 = vpack.i.b16 %v763_v13, %v762_v16  ;;  %v558_v25 = vcombine.high %v557_v12, %v1952_v43 }
 0x319   : > { %1678 = vmatpush3.bf16.xpose.msra.mxu1 %v984_v11  ;;  %v582_v14 = vrot.slane %v575_v10, %v2167_v32  ;;  %v1030_v21 = vsel %vm330_vm3, %v761_v15, 0 }
 0x31a   : > { %1689 = vmatprep.subr.bf16.mxu1 %v1943_v0  ;;  %v1076_v24 = vsel %vm330_vm3, %v764_v20, 0  ;;  %v593_v28 = vshrl.u32 %v558_v25, 16 }
 0x31b   : > { %v588_v17 = vshrl.u32 %v582_v14, 16  ;;  %v586_v18 = vpack.i.b16 %v582_v14, %v557_v12  ;;  %v583_v23 = vcombine.high %v582_v14, %v1952_v43 }
 0x31d   : > { %v589_v22 = vpack.i.b16 %v588_v17, %v587_v19  ;;  %v594_v26 = vshrl.u32 %v583_v23, 16  ;;  %v592_v27 = vpack.i.b16 %v583_v23, %v558_v25 }
 0x31e   : > { %1674 = vmatmul.mubr.msk.bf16.vlgmr.msra.gmra.mrb[4].mxu0 %vm330_vm3, %v586_v18 }
 0x31f   : > { %1684 = vmatpush3.bf16.xpose.msra.mxu0 %v1030_v21  ;;  %1685 = vmatprep.mubr.msk.bf16.mxu0 %vm1944_vm0, %v1943_v0  ;;  %v595_v30 = vpack.i.b16 %v594_v26, %v593_v28 }
 0x320   : > { %1680 = vmatmul.mubr.msk.bf16.vlgmr.msra.gmra.mrb[8].mxu1 %vm330_vm3, %v589_v22  ;;  %1695 = vmatprep.subr.bf16.mxu0 %v1943_v0 }
 0x321   : > { %1690 = vmatpush3.bf16.xpose.msra.mxu1 %v1076_v24  ;;  %1691 = vmatprep.mubr.msk.bf16.mxu1 %vm1944_vm0, %v1943_v0 }
 0x322   : > { %1701 = vmatprep.subr.bf16.mxu1 %v1943_v0 }
 0x326   : > { %1686 = vmatmul.mubr.msk.bf16.vlgmr.msra.gmra.mrb[8].mxu0 %vm330_vm3, %v592_v27 }
 0x327   : > { %1697 = vmatprep.mubr.msk.bf16.mxu0 %vm1944_vm0, %v1943_v0 }
 0x328   : > { %1692 = vmatmul.mubr.msk.bf16.vlgmr.msra.gmra.mrb[12].mxu1 %vm330_vm3, %v595_v30 }
 0x329   : > { %1703 = vmatprep.mubr.msk.bf16.mxu1 %vm1944_vm0, %v1943_v0 }
 0x3e2   : > { %v422_v31 = vpop.f32.mrb[4].mxu1 }
 0x3e3   : > { %v1669_v33 = vpop.f32.mrb[5].mxu1  ;;  %v428_v57 = vmul.f32 0.35355338, %v422_v31 }
 0x3e4   : > { %v425_v34 = vpop.f32.mrb[6].mxu1 }
 0x3e5   : > { %v1670_v35 = vpop.f32.mrb[7].mxu1  ;;  %v765_v58 = vpack.c.bf16 %v428_v57, %v428_v57 }
 0x3e7   : > { %v779_v25 = vrot.slane %v765_v58, %v2165_v29 }
 0x3f1   : > { %v974_v36 = vpop.f32.mrb[4].mxu0 }
 0x3f2   : > { %v1675_v37 = vpop.f32.mrb[5].mxu0  ;;  %v1118_v38 = vsel %vm330_vm3, %v974_v36, -inf }
 0x3f3   : > { %v1020_v39 = vpop.f32.mrb[8].mxu1  ;;  %1119 = vmax.xlane.f32.xlu0 %v1118_v38  ;;  %v977_v40 = vpop.f32.mrb[6].mxu0 }
 0x3f4   : > { %v1676_v41 = vpop.f32.mrb[7].mxu0  ;;  %v1681_v42 = vpop.f32.mrb[9].mxu1  ;;  %v1121_v44 = vsel %vm330_vm3, %v1020_v39, -inf }
 0x3f5   : > { %1122 = vmax.xlane.f32.xlu1 %v1121_v44  ;;  %v1023_v45 = vpop.f32.mrb[10].mxu1 }
 0x3f6   : > { %v1682_v46 = vpop.f32.mrb[11].mxu1 }
 0x3f9   : > { %v1066_v47 = vpop.f32.mrb[8].mxu0 }
 0x3fa   : > { %v1687_v48 = vpop.f32.mrb[9].mxu0  ;;  %v1124_v49 = vsel %vm330_vm3, %v1066_v47, -inf }
 0x3fb   : > { %v1112_v50 = vpop.f32.mrb[12].mxu1  ;;  %1125 = vmax.xlane.f32.xlu0 %v1124_v49  ;;  %v1069_v51 = vpop.f32.mrb[10].mxu0 }
 0x3fc   : > { %v1688_v52 = vpop.f32.mrb[11].mxu0  ;;  %v1693_v53 = vpop.f32.mrb[13].mxu1  ;;  %v1127_v56 = vsel %vm330_vm3, %v1112_v50, -inf }
 0x3fd   : > { %v1115_v54 = vpop.f32.mrb[14].mxu1 }
 0x3fe   : > { %v1694_v55 = vpop.f32.mrb[15].mxu1 }
 0x3ff   : > { %1128 = vmax.xlane.f32.xlu0 %v1127_v56 }
 0x406   : > { %767 = vrot.lane.b32.xlu1 %v765_v58, %s1947_s11  ;;  %s1867_s11 = scalar_lea.vmem %s2323_s14, 128 }
 0x407   : > { %p1868_p4 = scmp.ne.s32.totalorder %s2323_s14, %s1867_s11 }
 0x409   : > { %p1869_p6 = pnand %p1868_p4, %p2078_p12 }
 0x40b   : > { %p1870_p8 = pneg %p1869_p6 }
 0x480   : > { %v1120_v59 = vpop.xlane.xlu0 %1119 }
 0x481   : > { %v1130_v60 = vsub.f32 %v974_v36, %v1120_v59 }
 0x482   : > { %v1123_v61 = vpop.xlane.xlu1 %1122 }
 0x483   : > { %v1134_v62 = vmul.f32 1.442695, %v1130_v60  ;;  %v1131_v63 = vsub.f32 %v1020_v39, %v1123_v61 }
 0x485   : > { %1793 = vpow2.f32 %v1134_v62  ;;  %v1136_v1 = vmul.f32 1.442695, %v1131_v63 }
 0x486   : > { %v768_v16 = vpop.permute.xlu1 %767 }
 0x487   : > { %1795 = vpow2.f32 %v1136_v1  ;;  %v813_v20 = vrot.slane %v768_v16, %v2165_v29 }
 0x488   : > { %v1126_v6 = vpop.xlane.xlu0 %1125 }
 0x489   : > { %v1132_v8 = vsub.f32 %v1066_v47, %v1126_v6 }
 0x48b   : > { %v1138_v10 = vmul.f32 1.442695, %v1132_v8 }
 0x48c   : > { %v1129_v7 = vpop.xlane.xlu0 %1128 }
 0x48d   : > { %v1133_v9 = vsub.f32 %v1112_v50, %v1129_v7  ;;  %1797 = vpow2.f32 %v1138_v10 }
 0x48f   : > { %v2242_v2 = vpop.eup %1793  ;;  %v1140_v11 = vmul.f32 1.442695, %v1133_v9 }
 0x490   : > { %v1142_v3 = vsel %vm330_vm3, %v2242_v2, 0.0 }
 0x491   : > { %v2246_v4 = vpop.eup %1795  ;;  %1143 = vadd.xlane.f32.xlu1 %v1142_v3  ;;  %1799 = vpow2.f32 %v1140_v11 }
 0x492   : > { %v1145_v5 = vsel %vm330_vm3, %v2246_v4, 0.0 }
 0x493   : > { %1146 = vadd.xlane.f32.xlu0 %v1145_v5 }
 0x497   : > { %v2252_v12 = vpop.eup %1797 }
 0x498   : > { %v1148_v14 = vsel %vm330_vm3, %v2252_v12, 0.0 }
 0x49b   : > { %v2254_v13 = vpop.eup %1799 }
 0x49c   : > { %v1151_v15 = vsel %vm330_vm3, %v2254_v13, 0.0 }
 0x4a2   : > { %771 = vrot.lane.b32.xlu1 %v765_v58, %s1948_s12  ;;  %s1871_s12 = sshll.u32 %s1956_s17, 4  ;;  %s1872_s12 = int_to_ptr.vmem [resolvable:$false] %s1871_s12 }
 0x4a3   : > { %s1873_s10 = scalar_lea.vmem %s1872_s12, 256  ;;  %p1874_p10 = scmp.lt.s32.totalorder %s2323_s14, %s1872_s12 }
 0x4a4   : > { %p1875_p13 = scmp.lt.s32.totalorder %s1873_s10, %s1867_s11 }
 0x4a6   : > { %p1876_p3 = por %p1875_p13, %p1874_p10 }
 0x4a8   : > { %p1877_p7 = pnand %p1876_p3, %p1870_p8 }
 0x4a9   : > { %769 = vrot.lane.b32.xlu0 %v765_v58, %s1946_s15  ;;  %s2321_s15 = scalar_lea.hbm %s2371_s5, %s1625_s24 }
 0x4c6   : > { %1149 = vadd.xlane.f32.xlu1 %v1148_v14 }
 0x4c8   : > { %1152 = vadd.xlane.f32.xlu0 %v1151_v15 }
 0x51e   : > { %v1144_v17 = vpop.xlane.xlu1 %1143 }
 0x51f   : > { %1801 = vrcp.f32 %v1144_v17 }
 0x520   : > { %v1147_v18 = vpop.xlane.xlu0 %1146 }
 0x521   : > { %1803 = vrcp.f32 %v1147_v18 }
 0x522   : > { %v772_v19 = vpop.permute.xlu1 %771 }
 0x523   : > { %v821_v21 = vrot.slane %v772_v19, %v2165_v29 }
 0x524   : > { %v770_v22 = vpop.permute.xlu0 %769 }
 0x525   : > { %v822_v23 = vcombine.low %v813_v20, %v821_v21  ;;  %v823_v24 = vcombine.high %v813_v20, %v821_v21  ;;  %v787_v26 = vrot.slane %v770_v22, %v2165_v29 }
 0x527   : > { %v830_v27 = vrot.slane %v822_v23, %v2167_v32  ;;  %v837_v28 = vrot.slane %v823_v24, %v2167_v32  ;;  %v788_v30 = vcombine.low %v779_v25, %v787_v26  ;;  %v789_v31 = vcombine.high %v779_v25, %v787_v26 }
 0x529   : > { %v838_v33 = vcombine.high %v830_v27, %v1952_v43  ;;  %v839_v34 = vcombine.high %v837_v28, %v1952_v43  ;;  %v796_v35 = vrot.slane %v788_v30, %v2167_v32  ;;  %v803_v36 = vrot.slane %v789_v31, %v2167_v32  ;;  %v1802_v62 = vpop.eup %1801 }
 0x52a   : > { %v845_v37 = vshrl.u32 %v830_v27, 16  ;;  %v861_v38 = vshrl.u32 %v837_v28, 16  ;;  %v1158_v10 = vmul.f32 %v1802_v62, %v2242_v2 }
 0x52b   : > { %v853_v39 = vshrl.u32 %v838_v33, 16  ;;  %v804_v40 = vcombine.high %v796_v35, %v1952_v43  ;;  %v805_v41 = vcombine.high %v803_v36, %v1952_v43  ;;  %v842_v42 = vpack.i.b16 %v830_v27, %v796_v35  ;;  %v1804_v5 = vpop.eup %1803 }
 0x52c   : > { %v869_v44 = vshrl.u32 %v839_v34, 16  ;;  %v844_v45 = vshrl.u32 %v796_v35, 16  ;;  %v858_v46 = vpack.i.b16 %v837_v28, %v803_v36  ;;  %v860_v47 = vshrl.u32 %v803_v36, 16 }
 0x52d   : > { %v850_v48 = vpack.i.b16 %v838_v33, %v804_v40  ;;  %v852_v49 = vshrl.u32 %v804_v40, 16  ;;  %v866_v50 = vpack.i.b16 %v839_v34, %v805_v41  ;;  %v868_v51 = vshrl.u32 %v805_v41, 16 }
 0x52e   : > { %v846_v52 = vpack.i.b16 %v845_v37, %v844_v45  ;;  %v862_v53 = vpack.i.b16 %v861_v38, %v860_v47  ;;  %v872_v54 = vcombine.low %v842_v42, %v858_v46  ;;  %v1159_v17 = vmul.f32 %v1804_v5, %v2246_v4 }
 0x52f   : > { %v854_v55 = vpack.i.b16 %v853_v39, %v852_v49  ;;  %v870_v56 = vpack.i.b16 %v869_v44, %v868_v51  ;;  %v880_v57 = vcombine.low %v850_v48, %v866_v50  ;;  %v1162_v24 = vpack.c.bf16 %v1158_v10, %v1158_v10 }
 0x530   : > { %v897_v58 = vcombine.low %v846_v52, %v862_v53  ;;  %v879_v59 = vrot.slane %v872_v54, %v2165_v29  ;;  %v1163_v25 = vpack.c.bf16 %v1159_v17, %v1159_v17 }
 0x531   : > { %v905_v60 = vcombine.low %v854_v55, %v870_v56  ;;  %v887_v61 = vrot.slane %v880_v57, %v2165_v29 }
 0x532   : > { %v904_v1 = vrot.slane %v897_v58, %v2165_v29 }
 0x533   : > { %v888_v63 = vcombine.low %v879_v59, %v887_v61  ;;  %v912_v3 = vrot.slane %v905_v60, %v2165_v29 }
 0x535   : > { %v895_v6 = vrot.slane %v888_v63, %v2167_v32  ;;  %v913_v7 = vcombine.low %v904_v1, %v912_v3 }
 0x537   : > { %v920_v8 = vrot.slane %v913_v7, %v2167_v32  ;;  %v896_v9 = vcombine.high %v895_v6, %v1952_v43  ;;  %v925_v14 = vshrl.u32 %v895_v6, 16 }
 0x539   : > { %v924_v11 = vpack.i.b16 %v920_v8, %v895_v6  ;;  %v926_v15 = vshrl.u32 %v920_v8, 16  ;;  %v921_v16 = vcombine.high %v920_v8, %v1952_v43  ;;  %v931_v18 = vshrl.u32 %v896_v9, 16 }
 0x53b   : > { %v1170_v19 = vsel %vm334_vm2, %v924_v11, 0  ;;  %v927_v20 = vpack.i.b16 %v926_v15, %v925_v14  ;;  %v930_v21 = vpack.i.b16 %v921_v16, %v896_v9  ;;  %v932_v22 = vshrl.u32 %v921_v16, 16 }
 0x53c   : > { %1696 = vmatpush3.bf16.msra.mxu0 %v1170_v19 }
 0x53d   : > { %v1216_v23 = vsel %vm334_vm2, %v927_v20, 0  ;;  %1707 = vmatprep.subr.bf16.mxu0 %v1943_v0  ;;  %v933_v2 = vpack.i.b16 %v932_v22, %v931_v18  ;;  %v1262_v43 = vsel %vm334_vm2, %v930_v21, 0 }
 0x53e   : > { %1702 = vmatpush3.bf16.msra.mxu1 %v1216_v23 }
 0x53f   : > { %1698 = vmatmul.mubr.msk.bf16.vlgmr.msra.gmra.mrb[12].mxu0 %vm330_vm3, %v1162_v24  ;;  %1713 = vmatprep.subr.bf16.mxu1 %v1943_v0  ;;  %v1308_v4 = vsel %vm334_vm2, %v933_v2, 0 }
 0x540   : > { %1708 = vmatpush3.bf16.msra.mxu0 %v1262_v43  ;;  %1709 = vmatprep.mubr.msk.bf16.mxu0 %vm1944_vm0, %v1943_v0 }
 0x541   : > { %1704 = vmatmul.mubr.msk.bf16.vlgmr.msra.gmra.mrb[16].mxu1 %vm330_vm3, %v1163_v25 }
 0x542   : > { %1714 = vmatpush3.bf16.msra.mxu1 %v1308_v4  ;;  %1715 = vmatprep.mubr.msk.bf16.mxu1 %vm1944_vm0, %v1943_v0 }
 0x553   : > { %v1150_v26 = vpop.xlane.xlu1 %1149 }
 0x554   : > { %1805 = vrcp.f32 %v1150_v26 }
 0x555   : > { %v1153_v27 = vpop.xlane.xlu0 %1152 }
 0x556   : > { %1807 = vrcp.f32 %v1153_v27 }
 0x55e   : > { %v1806_v28 = vpop.eup %1805 }
 0x55f   : > { %v1160_v30 = vmul.f32 %v1806_v28, %v2252_v12 }
 0x560   : > { %v1808_v31 = vpop.eup %1807 }
 0x561   : > { %v1161_v33 = vmul.f32 %v1808_v31, %v2254_v13  ;;  %v1164_v34 = vpack.c.bf16 %v1160_v30, %v1160_v30 }
 0x563   : > { %1710 = vmatmul.mubr.msk.bf16.vlgmr.msra.gmra.mrb[16].mxu0 %vm330_vm3, %v1164_v34  ;;  %v1165_v35 = vpack.c.bf16 %v1161_v33, %v1161_v33 }
 0x565   : > { %1716 = vmatmul.mubr.msk.bf16.vlgmr.msra.gmra.mrb[20].mxu1 %vm330_vm3, %v1165_v35 }
 0x612   : > { %v1206_v36 = vpop.f32.mrb[12].mxu0 }
 0x613   : > { %v1699_v37 = vpop.f32.mrb[13].mxu0 }
 0x614   : > { %v1209_v38 = vpop.f32.mrb[14].mxu0  ;;  %v1252_v0 = vpop.f32.mrb[16].mxu1 }
 0x615   : > { %v1700_v39 = vpop.f32.mrb[15].mxu0  ;;  %v1705_v40 = vpop.f32.mrb[17].mxu1 }
 0x616   : > { %v1255_v41 = vpop.f32.mrb[18].mxu1 }
 0x617   : > { %v1706_v42 = vpop.f32.mrb[19].mxu1 }
 0x636   : > { %v1298_v44 = vpop.f32.mrb[16].mxu0 }
 0x637   : > { %v1350_v45 = vcombine.low %v1206_v36, %v1298_v44  ;;  %v1351_v12 = vcombine.high %v1206_v36, %v1298_v44  ;;  %v1711_v46 = vpop.f32.mrb[17].mxu0 }
 0x638   : > { %v1301_v47 = vpop.f32.mrb[18].mxu0  ;;  %v1344_v13 = vpop.f32.mrb[20].mxu1 }
 0x639   : > { %v1366_v48 = vcombine.low %v1252_v0, %v1344_v13  ;;  %v1367_v49 = vcombine.high %v1252_v0, %v1344_v13  ;;  %v1712_v50 = vpop.f32.mrb[19].mxu0  ;;  %v1717_v51 = vpop.f32.mrb[21].mxu1  ;;  %v1358_v53 = vrot.slane %v1350_v45, %v2165_v29  ;;  %v1365_v54 = vrot.slane %v1351_v12, %v2165_v29 }
 0x63a   : > { %v1347_v52 = vpop.f32.mrb[22].mxu1 }
 0x63b   : > { %v1374_v55 = vrot.slane %v1366_v48, %v2165_v29  ;;  %v1381_v56 = vrot.slane %v1367_v49, %v2165_v29  ;;  %v1718_v57 = vpop.f32.mrb[23].mxu1 }
 0x63d   : > { %v1382_v58 = vcombine.low %v1358_v53, %v1374_v55  ;;  %v1383_v59 = vcombine.high %v1358_v53, %v1374_v55  ;;  %v1398_v60 = vcombine.low %v1365_v54, %v1381_v56  ;;  %v1399_v61 = vcombine.high %v1365_v54, %v1381_v56 }
 0x63f   : > { %v1390_v62 = vrot.slane %v1382_v58, %v2167_v32  ;;  %v1397_v63 = vrot.slane %v1383_v59, %v2167_v32  ;;  %v1406_v1 = vrot.slane %v1398_v60, %v2167_v32  ;;  %v1413_v3 = vrot.slane %v1399_v61, %v2167_v32 }
 0x641   : > { %v1418_v5 = vcombine.low %v1390_v62, %v1397_v63  ;;  %v1622_v6 = vcombine.high %v1390_v62, %v1397_v63  ;;  %v1434_v7 = vcombine.low %v1406_v1, %v1413_v3  ;;  %v1623_v8 = vcombine.high %v1406_v1, %v1413_v3 }
 0x643   : > { %v1425_v9 = vrot.slane %v1418_v5, %v2165_v29  ;;  %v1433_v10 = vrot.slane %v1622_v6, %v2165_v29  ;;  %v1441_v11 = vrot.slane %v1434_v7, %v2165_v29  ;;  %v1449_v14 = vrot.slane %v1623_v8, %v2165_v29 }
 0x645   : > { %v1451_v15 = vcombine.high %v1425_v9, %v1433_v10  ;;  %v1467_v16 = vcombine.high %v1441_v11, %v1449_v14  ;;  %v1450_v17 = vcombine.low %v1425_v9, %v1433_v10  ;;  %v1466_v18 = vcombine.low %v1441_v11, %v1449_v14 }
 0x647   : > { %v1465_v19 = vrot.slane %v1451_v15, %v2167_v32  ;;  %v1481_v20 = vrot.slane %v1467_v16, %v2167_v32  ;;  %v1458_v21 = vrot.slane %v1450_v17, %v2167_v32  ;;  %v1474_v22 = vrot.slane %v1466_v18, %v2167_v32 }
 0x649   : > { %v1484_v23 = vcombine.low %v1465_v19, %v1481_v20  ;;  %v1483_v24 = vcombine.high %v1458_v21, %v1474_v22  ;;  %v1485_v2 = vcombine.high %v1465_v19, %v1481_v20  ;;  %v1482_v43 = vcombine.low %v1458_v21, %v1474_v22 }
 0x64b   : > { %1491 = vrot.lane.b32.xlu1 %v1484_v23, %s1953_s28  ;;  %1487 = vrot.lane.b32.xlu0 %v1483_v24, %s1954_s23 }
 0x64f   : > { %1495 = vrot.lane.b32.xlu1 %v1485_v2, %s1955_s27 }
 0x6bd   : > { %v1492_v29 = vpop.permute.xlu1 %1491  ;;  %v1488_v25 = vpop.permute.xlu0 %1487 }
 0x6be   : > { %v1498_v4 = vsel %vm330_vm3, %v1482_v43, %v1488_v25 }
 0x6bf   : > { %v1500_v26 = vsel %vm1499_vm4, %v1498_v4, %v1492_v29 }
 0x6c1   : > { %v1496_v32 = vpop.permute.xlu1 %1495 }
 0x6c2   : > { %v1502_v27 = vsel %vm1501_vm5, %v1500_v26, %v1496_v32 }
 0x6c3   : > { %1503 = vst.msk [vmem:[%s254_s26] sm:$0xff] %vm281_vm1, %v1502_v27 }
 0x6c4   : > { %1880 = shalt.err (!%p1877_p7)
}
 0x6c5   : > { %s1881_s16 = scalar_lea.hbm %s2321_s15, 128  ;;  %s1885_s28 = scalar_lea.hbm %s2371_s5, 256 }
 0x6c6   : > { %p1882_p9 = scmp.ne.s32.totalorder %s2321_s15, %s1881_s16  ;;  %p1886_p0 = scmp.lt.u32.totalorder %s2321_s15, %s2371_s5 }
 0x6c7   : > { %p1887_p11 = scmp.lt.u32.totalorder %s1885_s28, %s1881_s16  ;;  %p1889_p4 = scmp.lt.u32.totalorder %s1881_s16, %s2321_s15 }
 0x6c8   : > { %p1883_p2 = pnand %p1882_p9, %p2078_p12 }
 0x6c9   : > { %p1888_p1 = por %p1887_p11, %p1886_p0 }
 0x6ca   : > { %p1884_p5 = pneg %p1883_p2 }
 0x6cb   : > { %p1890_p6 = por %p1889_p4, %p1888_p1 }
 0x6cd   : > { %p1891_p8 = pnand %p1890_p6, %p1884_p5 }
 0x6cf   : > { %1894 = shalt.err (!%p1891_p8)
}
 0x6d0   : > { %1725 = dma.vmem_to_hbm [thread:$0]  (%p2078_p12), %s2323_s14, 128, %s2321_s15, %s1505_s22  }
 0x6d1 PF: > { %s1530_s24 = sand.u32 1, %s1925_s18   ;;  %p2386_p10 = scmp.ne.s32.totalorder %s2376_s25, 0 }
 0x6d2   : > { %p2387_p13 = scmp.ge.s32.totalorder %s1937_s21, 2  ;;  %s1531_s26 = scalar_lea.sflag [#allocation4], %s1530_s24 }
 0x6d4   : > { %p1736_p3 = pnand %p2387_p13, %p2386_p10 }
 0x6d6   : > { %1920 = dma.done.wait (!%p1736_p3), %s1531_s26, 128  }
 0x6d7   : > { %1922 = vsyncadd (!%p1736_p3), %s1531_s26, 4294967168  ;;  %p19_p7 = scmp.ge.s32.totalorder %s2043_s30, 4   ;;  %s2388_s18 = smov %s1929_s19 }
 0x6d8   : > { %s2389_s19 = smov %s1933_s20  ;;  %s2390_s20 = smov %s2074_s8 }
 0x6d9   : > { %s2391_s21 = smov %s2043_s30  ;;  %21 = sbr.rel (!%p19_p7) target bundleno = 6 (0x6), region = 89 }
 0x6e0   :  { %1536 = vsyncpa [#allocation3], 1 }
 0x6e1   :  { %1538 = vsyncpa [#allocation3 + $0x1], 1 }
 0x6e2   :  { %1539 = vsyncpa [#allocation6], 1 }
 0x6e3   :  { %1540 = vsyncpa [#allocation4], 1 }
 0x6e4   :  { %1542 = vsyncpa [#allocation4 + $0x1], 1 }

</bundles_post_ra>
